<compile_context>
chip_gen: v6e
topology: v6e:2x2x1
jax: 0.10.0
libtpu: 0.0.40
codegen_flags: <defaults>
</compile_context>

<pallas_src>
import functools
import math

import jax
import jax.numpy as jnp
from jax.experimental import pallas as pl
from jax.experimental.pallas import tpu as pltpu


def _round_up(x, m):
    return (x + m - 1) // m * m


def _som_kernel(z_ref, w_ref, nodes_ref, nsq_ref, q_ref, bmu_ref, qsq_ref, *,
                alpha, n_valid):
    """Per sample-tile: q^T (G, tm), BMU indices (1, tm), partial sum_i q^2 (1, G, 1)."""
    tm, D = z_ref.shape
    G = nodes_ref.shape[0]

    # Fused time weighting: weighted_z never hits HBM (w is a 4-byte/row side input).
    z = z_ref[...].astype(jnp.float32) * w_ref[...].astype(jnp.float32)   # (tm, D)
    nodes = nodes_ref[...].astype(jnp.float32)                            # (G, D)

    # Squared distances, transposed: d2[g, i] = ||n_g||^2 + ||z_i||^2 - 2 n_g . z_i
    nt = (((1,), (1,)), ((), ()))   # contract last dims of both operands (A @ B^T)
    cross_t = jax.lax.dot_general(nodes, z, nt,
                                  preferred_element_type=jnp.float32)     # (G, tm)
    ones_row = jnp.ones((1, D), jnp.float32)
    zsq_t = jax.lax.dot_general(ones_row, z * z, nt,
                                preferred_element_type=jnp.float32)       # (1, tm)
    # TODO(synk): the expanded form loses relative precision for small distances
    # between large-magnitude latents (clamped at 0); acceptable for forward-only use.
    d2 = jnp.maximum(nsq_ref[...] + zsq_t - 2.0 * cross_t, 0.0)           # (G, tm)

    # BMU: argmin over nodes, first occurrence (like torch.min), entirely in int32.
    min_d2 = jnp.min(d2, axis=0, keepdims=True)                           # (1, tm)
    gidx = jax.lax.broadcasted_iota(jnp.int32, d2.shape, 0)               # (G, tm)
    bmu_ref[...] = jnp.min(jnp.where(d2 <= min_d2, gidx, jnp.int32(G)),
                           axis=0, keepdims=True)                         # (1, tm)

    # Student-t soft assignment on the *plain* L2 distance (matches the module:
    # q = 1 / (1 + dist/alpha) ** ((alpha+1)/2)), L1-normalized over nodes (axis 0).
    # Exact divides (not approx reciprocals): q feeds log(q) in the KL term.
    # TODO(synk): sqrt(0) has an unbounded gradient and this kernel has no custom VJP;
    # forward-only -- do not differentiate through the pallas_call outputs.
    dist = jnp.sqrt(d2)
    scaled = dist if alpha == 1.0 else dist * jnp.float32(1.0 / alpha)
    expnt = (alpha + 1.0) / 2.0
    if expnt == 1.0:
        q_un = 1.0 / (1.0 + scaled)
    else:
        q_un = jnp.exp(-jnp.float32(expnt) * jnp.log(1.0 + scaled))
    q = q_un / jnp.sum(q_un, axis=0, keepdims=True)                       # (G, tm)
    q_ref[...] = q

    # Per-tile partial sum of q^2 per node (padded columns masked out), so the target
    # distribution's denominator needs no extra full HBM pass over q afterwards.
    col = (jax.lax.broadcasted_iota(jnp.int32, (1, tm), 1)
           + pl.program_id(0) * tm)                                       # (1, tm)
    qsq = jnp.sum(jnp.where(col < n_valid, q * q, 0.0),
                  axis=1, keepdims=True)                                  # (G, 1)
    qsq_ref[...] = qsq.reshape(1, G, 1)


def _choose_tile(N, tm_desired):
    """Lane-aligned sample tile; guarantee >= 2 grid steps whenever the problem allows
    so the "parallel" axis can shard across both TensorCores on v7x."""
    n_min = _round_up(N, 128)
    tm = _round_up(min(tm_desired, n_min), 128)
    if n_min > 128:                              # enough rows to split in two
        tm = min(tm, _round_up((N + 1) // 2, 128))
    tm = max(tm, 128)
    return tm, _round_up(N, tm)


def som_forward(z, nodes, *, alpha=1.0, time_decay=0.9, tm=4096,
                torch_layout_q=True):
    """Replicates SOMLayer.forward.  Returns (som_z, aux_dict).

    All internal math uses the lane-dense (G, N) layout (aux["q_t"]).  Set
    torch_layout_q=False for large N to skip the extra (N, G) transpose copy of q.
    """
    B, T, D = z.shape
    g0, g1, _ = nodes.shape
    G = g0 * g1
    N = B * T

    tm, N_pad = _choose_tile(N, tm)
    n_steps = N_pad // tm

    # z streamed in its input dtype (bf16 latents stay bf16 in HBM; the kernel upcasts
    # per tile), zero-padded up to the tile boundary.
    z_flat = z.reshape(N, D)
    z_pad = jnp.pad(z_flat, ((0, N_pad - N), (0, 0)))

    # Precomputed per-row time weight: row r (t = r % T) gets decay ** (T-1-t), which
    # equals the module's time_weights[:, -T:, :] buffer slice.
    t_idx = jnp.arange(T, dtype=jnp.float32)
    w_t = jnp.power(jnp.float32(time_decay), jnp.float32(T - 1) - t_idx)  # (T,)
    w_flat = jnp.broadcast_to(w_t[None, :], (B, T)).reshape(N, 1)
    w_pad = jnp.pad(w_flat, ((0, N_pad - N), (0, 0)))

    nodes_flat = nodes.reshape(G, D).astype(jnp.float32)
    n_sq = jnp.sum(nodes_flat * nodes_flat, axis=-1, keepdims=True)       # (G, 1)

    if n_steps >= 3:   # 3-deep pipelining on the streamed inputs hides DMA issue latency
        z_spec = pl.BlockSpec((tm, D), lambda i: (i, 0), pipeline_mode=pl.Buffered(3))
        w_spec = pl.BlockSpec((tm, 1), lambda i: (i, 0), pipeline_mode=pl.Buffered(3))
    else:
        z_spec = pl.BlockSpec((tm, D), lambda i: (i, 0))
        w_spec = pl.BlockSpec((tm, 1), lambda i: (i, 0))

    kernel = functools.partial(_som_kernel, alpha=float(alpha), n_valid=N)
    q_t_pad, bmu_pad, qsq_part = pl.pallas_call(
        kernel,
        out_shape=(
            jax.ShapeDtypeStruct((G, N_pad), jnp.float32),        # q^T, lane-dense
            jax.ShapeDtypeStruct((1, N_pad), jnp.int32),          # BMU row, lane-dense
            jax.ShapeDtypeStruct((n_steps, G, 1), jnp.float32),   # per-tile sum_i q^2
        ),
        grid_spec=pltpu.PrefetchScalarGridSpec(
            num_scalar_prefetch=0,
            grid=(n_steps,),
            in_specs=[
                z_spec,                                           # z sample-tile
                w_spec,                                           # per-row time weight
                pl.BlockSpec((G, D), lambda i: (0, 0)),           # all nodes, resident
                pl.BlockSpec((G, 1), lambda i: (0, 0)),           # precomputed ||n||^2
            ],
            out_specs=(
                pl.BlockSpec((G, tm), lambda i: (0, i)),
                pl.BlockSpec((1, tm), lambda i: (0, i)),
                pl.BlockSpec((1, G, 1), lambda i: (i, 0, 0)),
            ),
        ),
        compiler_params=pltpu.CompilerParams(
            dimension_semantics=("parallel",)),   # independent tiles -> 2 TCs on v7x
    )(z_pad, w_pad, nodes_flat, n_sq)

    q_t = q_t_pad[:, :N]                                   # (G, N)  drop padding
    bmu = bmu_pad[0, :N]                                   # (N,)
    q2_den = jnp.sum(qsq_part, axis=0)                     # (G, 1) = sum_i q[i,g]^2

    # ---- glue losses (global reductions over N, plain JAX, transposed layout) ----
    p_t = (q_t * q_t) / q2_den                             # / sum over samples
    p_t = p_t / jnp.sum(p_t, axis=0, keepdims=True)        # L1 normalize over nodes
    p_t = jax.lax.stop_gradient(p_t)                       # p.detach() in the module

    # F.kl_div(q.log(), p, reduction='batchmean') = sum(p * (log p - log q)) / N
    kl_loss = jnp.sum(p_t * (jnp.log(p_t) - jnp.log(q_t))) / N

    # diversity: -mean pairwise node distance (G x G, tiny -> plain JAX)
    diff = nodes_flat[:, None, :] - nodes_flat[None, :, :]
    diversity_loss = -jnp.mean(jnp.sqrt(jnp.sum(diff * diff, axis=-1)))

    # temporal smoothness on the ORIGINAL z (as in the PyTorch code)
    time_smooth_loss = jnp.mean((z[:, 1:] - z[:, :-1]) ** 2) * time_decay

    # neighborhood consistency of BMU grid coordinates (Manhattan distance)
    bmu_bt = bmu.reshape(B, T)
    rows = bmu_bt // g1
    cols = bmu_bt % g1
    man = (jnp.abs(rows[:, 1:] - rows[:, :-1])
           + jnp.abs(cols[:, 1:] - cols[:, :-1])).astype(jnp.float32)
    neighbor_loss = jnp.sum(jnp.mean(man, axis=1)) / B

    total_loss = (kl_loss + 0.5 * diversity_loss
                  + 0.3 * time_smooth_loss + 0.2 * neighbor_loss)

    # som_z = z + 0.1 * (nodes[bmu] - z)
    som_z = z + 0.1 * (nodes_flat[bmu].reshape(B, T, D).astype(z.dtype) - z)

    aux = {
        "total_loss": total_loss,
        "kl_loss": kl_loss,
        "diversity_loss": diversity_loss,
        "time_smooth_loss": time_smooth_loss,
        "neighbor_loss": neighbor_loss,
        "q_t": q_t,                                        # lane-dense (G, N) layout
        "bmu_indices": bmu_bt,
    }
    if torch_layout_q:
        # PyTorch-layout copy of q, kept only for parity with the module's aux dict;
        # it costs an extra HBM transpose pass over q -- disable for large N.
        aux["q"] = q_t.T
    return som_z, aux


if __name__ == "__main__":
    key = jax.random.PRNGKey(0)
    kz, kn = jax.random.split(key)

    B, T, D = 2, 8, 32
    grid_size = (4, 4)

    z = jax.random.normal(kz, (B, T, D), dtype=jnp.float32)
    # deterministic stand-in for nn.Parameter(torch.randn(g0, g1, D))
    nodes = jax.random.normal(kn, (grid_size[0], grid_size[1], D), dtype=jnp.float32)

    fwd = jax.jit(functools.partial(som_forward, alpha=1.0, time_decay=0.9))
    som_z, aux = fwd(z, nodes)

    jax.block_until_ready(som_z)
    jax.block_until_ready(aux["total_loss"])
    jax.block_until_ready(aux["bmu_indices"])

    G = grid_size[0] * grid_size[1]
    N = B * T
    assert som_z.shape == (B, T, D)
    assert aux["q"].shape == (N, G)
    assert aux["q_t"].shape == (G, N)
    assert aux["bmu_indices"].shape == (B, T)
    assert bool(jnp.isfinite(aux["total_loss"]))
    # q rows should sum to 1 (exact divides in-kernel) and BMUs be valid node indices
    assert bool(jnp.all(jnp.abs(jnp.sum(aux["q"], axis=-1) - 1.0) < 1e-3))
    assert bool(jnp.all((aux["bmu_indices"] >= 0) & (aux["bmu_indices"] < G)))

    print("KERNEL_OK")
</pallas_src>

<mosaic_0001>
module attributes {stable_mosaic.version = 11 : i64} {
  func.func @_som_kernel(%arg0: i32, %arg1: memref<128x32xf32, #tpu.memory_space<vmem>>, %arg2: memref<128x1xf32, #tpu.memory_space<vmem>>, %arg3: memref<16x32xf32, #tpu.memory_space<vmem>>, %arg4: memref<16x1xf32, #tpu.memory_space<vmem>>, %arg5: memref<16x128xf32, #tpu.memory_space<vmem>>, %arg6: memref<1x128xi32, #tpu.memory_space<vmem>>, %arg7: memref<1x16x1xf32, #tpu.memory_space<vmem>>) attributes {dimension_semantics = [#tpu.dimension_semantics<parallel>], iteration_bounds = array<i64: 1>, scalar_prefetch = 0 : i64, scratch_operands = 0 : i64, tpu.core_type = #tpu.core_type<tc>, window_params = [{transform_indices = @transform_0, window_bounds = array<i64: 128, 32>}, {transform_indices = @transform_1, window_bounds = array<i64: 128, 1>}, {pipeline_mode = #tpu.pipeline_mode<synchronous>, transform_indices = @transform_2, window_bounds = array<i64: 16, 32>}, {pipeline_mode = #tpu.pipeline_mode<synchronous>, transform_indices = @transform_3, window_bounds = array<i64: 16, 1>}, {transform_indices = @transform_4, window_bounds = array<i64: 16, 128>}, {transform_indices = @transform_5, window_bounds = array<i64: 1, 128>}, {transform_indices = @transform_6, window_bounds = array<i64: 1, 16, 1>}]} {
    %c0 = arith.constant 0 : index
    %c0_0 = arith.constant 0 : index
    %0 = vector.load %arg1[%c0, %c0_0] : memref<128x32xf32, #tpu.memory_space<vmem>>, vector<128x32xf32>
    %c0_1 = arith.constant 0 : index
    %c0_2 = arith.constant 0 : index
    %1 = vector.load %arg2[%c0_1, %c0_2] : memref<128x1xf32, #tpu.memory_space<vmem>>, vector<128x1xf32>
    %2 = vector.broadcast %1 : vector<128x1xf32> to vector<128x32xf32>
    %3 = arith.mulf %0, %2 : vector<128x32xf32>
    %c0_3 = arith.constant 0 : index
    %c0_4 = arith.constant 0 : index
    %4 = vector.load %arg3[%c0_3, %c0_4] : memref<16x32xf32, #tpu.memory_space<vmem>>, vector<16x32xf32>
    %cst = arith.constant dense<0.000000e+00> : vector<16x128xf32>
    %5 = tpu.matmul %4, %3, %cst {dimension_numbers = #tpu.dot_dimension_numbers<[1], [1], [0], [0], [0, 0, 1, 0], [], []>} : vector<16x32xf32>, vector<128x32xf32>, vector<16x128xf32> -> vector<16x128xf32>
    %cst_5 = arith.constant 1.000000e+00 : f32
    %6 = vector.broadcast %cst_5 : f32 to vector<1x32xf32>
    %7 = arith.mulf %3, %3 : vector<128x32xf32>
    %cst_6 = arith.constant dense<0.000000e+00> : vector<1x128xf32>
    %8 = tpu.matmul %6, %7, %cst_6 {dimension_numbers = #tpu.dot_dimension_numbers<[1], [1], [0], [0], [0, 0, 1, 0], [], []>} : vector<1x32xf32>, vector<128x32xf32>, vector<1x128xf32> -> vector<1x128xf32>
    %c0_7 = arith.constant 0 : index
    %c0_8 = arith.constant 0 : index
    %9 = vector.load %arg4[%c0_7, %c0_8] : memref<16x1xf32, #tpu.memory_space<vmem>>, vector<16x1xf32>
    %10 = vector.broadcast %9 : vector<16x1xf32> to vector<16x128xf32>
    %11 = vector.broadcast %8 : vector<1x128xf32> to vector<16x128xf32>
    %12 = arith.addf %10, %11 : vector<16x128xf32>
    %cst_9 = arith.constant 2.000000e+00 : f32
    %13 = vector.broadcast %cst_9 : f32 to vector<16x128xf32>
    %14 = arith.mulf %13, %5 : vector<16x128xf32>
    %15 = arith.subf %12, %14 : vector<16x128xf32>
    %cst_10 = arith.constant 0.000000e+00 : f32
    %16 = vector.broadcast %cst_10 : f32 to vector<16x128xf32>
    %17 = arith.maximumf %15, %16 : vector<16x128xf32>
    %cst_11 = arith.constant dense<0x7F800000> : vector<128xf32>
    %18 = vector.multi_reduction <minimumf>, %17, %cst_11 [0] : vector<16x128xf32> to vector<128xf32>
    %19 = vector.shape_cast %18 : vector<128xf32> to vector<1x128xf32>
    %20 = tpu.iota {dimensions = array<i32: 0>} : vector<16x128xi32>
    %21 = vector.broadcast %19 : vector<1x128xf32> to vector<16x128xf32>
    %22 = arith.cmpf ole, %17, %21 : vector<16x128xf32>
    %c16_i32 = arith.constant 16 : i32
    %23 = vector.broadcast %c16_i32 : i32 to vector<16x128xi32>
    %24 = arith.select %22, %20, %23 : vector<16x128xi1>, vector<16x128xi32>
    %cst_12 = arith.constant dense<2147483647> : vector<128xi32>
    %25 = vector.multi_reduction <minsi>, %24, %cst_12 [0] : vector<16x128xi32> to vector<128xi32>
    %26 = vector.shape_cast %25 : vector<128xi32> to vector<1x128xi32>
    %c0_13 = arith.constant 0 : index
    %c0_14 = arith.constant 0 : index
    %27 = vector.load %arg6[%c0_13, %c0_14] : memref<1x128xi32, #tpu.memory_space<vmem>>, vector<1x128xi32>
    tpu.vector_store %arg6[%c0_13, %c0_14], %26 {strides = array<i32>} : memref<1x128xi32, #tpu.memory_space<vmem>>, vector<1x128xi32>,
    %28 = math.sqrt %17 : vector<16x128xf32>
    %cst_15 = arith.constant 1.000000e+00 : f32
    %29 = vector.broadcast %cst_15 : f32 to vector<16x128xf32>
    %30 = arith.addf %29, %28 : vector<16x128xf32>
    %cst_16 = arith.constant 1.000000e+00 : f32
    %31 = vector.broadcast %cst_16 : f32 to vector<16x128xf32>
    %32 = arith.divf %31, %30 : vector<16x128xf32>
    %cst_17 = arith.constant dense<0.000000e+00> : vector<128xf32>
    %33 = vector.multi_reduction <add>, %32, %cst_17 [0] : vector<16x128xf32> to vector<128xf32>
    %34 = vector.shape_cast %33 : vector<128xf32> to vector<1x128xf32>
    %35 = vector.broadcast %34 : vector<1x128xf32> to vector<16x128xf32>
    %36 = arith.divf %32, %35 : vector<16x128xf32>
    %c0_18 = arith.constant 0 : index
    %c0_19 = arith.constant 0 : index
    %37 = vector.load %arg5[%c0_18, %c0_19] : memref<16x128xf32, #tpu.memory_space<vmem>>, vector<16x128xf32>
    tpu.vector_store %arg5[%c0_18, %c0_19], %36 {strides = array<i32>} : memref<16x128xf32, #tpu.memory_space<vmem>>, vector<16x128xf32>,
    %38 = tpu.iota {dimensions = array<i32: 1>} : vector<1x128xi32>
    %c128_i32 = arith.constant 128 : i32
    %39 = arith.muli %arg0, %c128_i32 : i32
    %40 = vector.broadcast %39 : i32 to vector<1x128xi32>
    %41 = arith.addi %38, %40 : vector<1x128xi32>
    %c16_i32_20 = arith.constant 16 : i32
    %42 = vector.broadcast %c16_i32_20 : i32 to vector<1x128xi32>
    %43 = arith.cmpi slt, %41, %42 : vector<1x128xi32>
    %44 = arith.mulf %36, %36 : vector<16x128xf32>
    %cst_21 = arith.constant 0.000000e+00 : f32
    %45 = vector.shape_cast %43 : vector<1x128xi1> to vector<1x128xi1>
    %46 = vector.broadcast %45 : vector<1x128xi1> to vector<16x128xi1>
    %47 = vector.broadcast %cst_21 : f32 to vector<16x128xf32>
    %48 = arith.select %46, %44, %47 : vector<16x128xi1>, vector<16x128xf32>
    %cst_22 = arith.constant dense<0.000000e+00> : vector<16xf32>
    %49 = vector.multi_reduction <add>, %48, %cst_22 [1] : vector<16x128xf32> to vector<16xf32>
    %50 = vector.shape_cast %49 : vector<16xf32> to vector<16x1xf32>
    %51 = vector.shape_cast %50 : vector<16x1xf32> to vector<1x16x1xf32>
    %c0_23 = arith.constant 0 : index
    %c0_24 = arith.constant 0 : index
    %c0_25 = arith.constant 0 : index
    %52 = vector.load %arg7[%c0_23, %c0_24, %c0_25] : memref<1x16x1xf32, #tpu.memory_space<vmem>>, vector<1x16x1xf32>
    tpu.vector_store %arg7[%c0_23, %c0_24, %c0_25], %51 {strides = array<i32>} : memref<1x16x1xf32, #tpu.memory_space<vmem>>, vector<1x16x1xf32>,
    return
  }
  func.func @transform_0(%arg0: i32) -> (i32, i32) {
    %c0_i32 = arith.constant 0 : i32
    %c0_i32_0 = arith.constant 0 : i32
    return %arg0, %c0_i32 : i32, i32
  }
  func.func @transform_1(%arg0: i32) -> (i32, i32) {
    %c0_i32 = arith.constant 0 : i32
    %c0_i32_0 = arith.constant 0 : i32
    return %arg0, %c0_i32 : i32, i32
  }
  func.func @transform_2(%arg0: i32) -> (i32, i32) {
    %c0_i32 = arith.constant 0 : i32
    %c0_i32_0 = arith.constant 0 : i32
    %c0_i32_1 = arith.constant 0 : i32
    return %c0_i32, %c0_i32_0 : i32, i32
  }
  func.func @transform_3(%arg0: i32) -> (i32, i32) {
    %c0_i32 = arith.constant 0 : i32
    %c0_i32_0 = arith.constant 0 : i32
    %c0_i32_1 = arith.constant 0 : i32
    return %c0_i32, %c0_i32_0 : i32, i32
  }
  func.func @transform_4(%arg0: i32) -> (i32, i32) {
    %c0_i32 = arith.constant 0 : i32
    %c0_i32_0 = arith.constant 0 : i32
    return %c0_i32, %arg0 : i32, i32
  }
  func.func @transform_5(%arg0: i32) -> (i32, i32) {
    %c0_i32 = arith.constant 0 : i32
    %c0_i32_0 = arith.constant 0 : i32
    return %c0_i32, %arg0 : i32, i32
  }
  func.func @transform_6(%arg0: i32) -> (i32, i32, i32) {
    %c0_i32 = arith.constant 0 : i32
    %c0_i32_0 = arith.constant 0 : i32
    %c0_i32_1 = arith.constant 0 : i32
    return %arg0, %c0_i32, %c0_i32_0 : i32, i32, i32
  }
}

</mosaic_0001>

<bundles_post_ra>
// kernel: squeeze.3
= control target key start
LH: loop header
LB: loop body
LE: loop exit
PB: predicated region body
PF: predicated region fallthrough
CT: control target
= control target key end

     0   :  { %vm8_vm0 = vcmask 64512   ;;  %s42_s0 = inlined_call_operand.vmem [shape: s32[16], index: 0, kind: input, shape index: {}]   ;;  %s43_s1 = inlined_call_operand.vmem [shape: s32[2,8], index: 1, kind: output, shape index: {}]  }
   0x1   :  { %v5_v0 = vld [vmem:[%s42_s0] sm:$0x1]  ;;  %s25_s0 = smov 120  }
   0x2   :  { %6 = vst [vmem:[#allocation1] sm:$0x1] %v5_v0 }
   0x9   :  { %v10_v1 = vld [vmem:[#allocation1] sm:$0x1]  }
   0xa   :  { %v7_v2 = vld [vmem:[#allocation1] sm:$0x1]   ;;  %11 = vrot.lane.b32.xlu0 %v10_v1, %s25_s0 }
   0xb   :  { %9 = vst.msk [vmem:[#allocation0] sm:$0x1] %vm8_vm0, %v7_v2  }
  0x7c   :  { %v12_v3 = vpop.permute.xlu0 %11  }
  0x7d   :  { %15 = vst.msk [vmem:[#allocation0 + $0x1] sm:$0x1] %vm8_vm0, %v12_v3  }
  0x84   :  { %v20_v4 = vld [vmem:[#allocation0] sm:$0x3] }
  0x85   :  { %23 = vst [vmem:[%s43_s1] sm:$0x3] %v20_v4 }

// kernel: som_forward.1
= control target key start
LH: loop header
LB: loop body
LE: loop exit
PB: predicated region body
PF: predicated region fallthrough
CT: control target
= control target key end

     0   :  { %v686_v0 = vmov 0   ;;  %v687_v5 = vmov 0.0   ;;  %vm150_vm0 = vcmask 261120   ;;  %vm688_vm1 = vmmov 0   ;;  %s918_s1 = inlined_call_operand.vmem [shape: f32[128,1], index: 1, kind: input, shape index: {}]   ;;  %s919_s3 = inlined_call_operand.vmem [shape: f32[16,1], index: 3, kind: input, shape index: {}]   ;;  %s920_s2 = inlined_call_operand.vmem [shape: f32[16,32], index: 2, kind: input, shape index: {}]   ;;  %s921_s0 = inlined_call_operand.vmem [shape: f32[128,32], index: 0, kind: input, shape index: {}]   ;;  %s922_s5 = inlined_call_operand.vmem [shape: s32[1,128], index: 5, kind: output, shape index: {1}]   ;;  %s923_s4 = inlined_call_operand.vmem [shape: f32[16,128], index: 4, kind: output, shape index: {0}]   ;;  %s924_s6 = inlined_call_operand.vmem [shape: f32[1,16,1], index: 6, kind: output, shape index: {2}]  }
   0x1   :  { %675 = vset.pattern.permute.xlu1 %v686_v0  ;;  %674 = vset.pattern.permute.xlu0 %v686_v0  ;;  %v51_v1 = vld [vmem:[%s918_s1 + $0x78] sm:$0xff]  ;;  %v49_v2 = vld [vmem:[%s918_s1 + $0x68] sm:$0xff]  ;;  %v50_v3 = vld [vmem:[%s918_s1 + $0x70] sm:$0xff]  ;;  %vm515_vm13 = vcmask 7168  }
   0x2   :  { %129 = vperm.xlu0 %674, %v51_v1   ;;  %119 = vperm.xlu1 %675, %v49_v2   ;;  %v48_v4 = vld [vmem:[%s918_s1 + $0x60] sm:$0xff]  ;;  %v47_v6 = vld [vmem:[%s918_s1 + $0x58] sm:$0xff]  ;;  %v46_v7 = vld [vmem:[%s918_s1 + $0x50] sm:$0xff] }
   0x3   :  { %635 = vmatprep.subr.mxu1 %v687_v5  ;;  %v45_v8 = vld [vmem:[%s918_s1 + $0x48] sm:$0xff]  ;;  %v44_v9 = vld [vmem:[%s918_s1 + $0x40] sm:$0xff]  ;;  %v43_v10 = vld [vmem:[%s918_s1 + $0x38] sm:$0xff]  ;;  %667 = vmatprep.mubr.msk.f32.mxu1 %vm688_vm1, %v687_v5 }
   0x4   :  { %v42_v11 = vld [vmem:[%s918_s1 + $0x30] sm:$0xff]  ;;  %v41_v12 = vld [vmem:[%s918_s1 + $0x28] sm:$0xff]  ;;  %v40_v13 = vld [vmem:[%s918_s1 + $0x20] sm:$0xff] }
   0x5   :  { %v39_v14 = vld [vmem:[%s918_s1 + $0x18] sm:$0xff]  ;;  %v38_v15 = vld [vmem:[%s918_s1 + $0x10] sm:$0xff]  ;;  %v37_v16 = vld [vmem:[%s918_s1 + $0x8] sm:$0xff] }
   0x6   :  { %124 = vperm.xlu0 %674, %v50_v3   ;;  %114 = vperm.xlu1 %675, %v48_v4   ;;  %v36_v17 = vld [vmem:[%s918_s1] sm:$0xff]  ;;  %v418_v19 = vld [vmem:[%s919_s3 + $0x8] sm:$0xff]  ;;  %v35_v21 = vld [vmem:[%s921_s0 + $0x78] sm:$0xff] }
   0x7   :  { %v417_v18 = vld [vmem:[%s919_s3] sm:$0xff]  ;;  %v33_v24 = vld [vmem:[%s921_s0 + $0x68] sm:$0xff]  ;;  %v34_v25 = vld [vmem:[%s921_s0 + $0x70] sm:$0xff] }
   0x8   :  { %v148_v20 = vld [vmem:[%s920_s2] sm:$0xff]  ;;  %v31_v37 = vld [vmem:[%s921_s0 + $0x58] sm:$0xff]  ;;  %v30_v41 = vld [vmem:[%s921_s0 + $0x50] sm:$0xff] }
   0x9   :  { %632 = vmatprep.mubr.msk.f32.mxu0 %vm150_vm0, %v148_v20  ;;  %v32_v32 = vld [vmem:[%s921_s0 + $0x60] sm:$0xff]  ;;  %v29_v45 = vld [vmem:[%s921_s0 + $0x48] sm:$0xff]  ;;  %v27_v53 = vld [vmem:[%s921_s0 + $0x38] sm:$0xff] }
   0xa   :  { %109 = vperm.xlu0 %674, %v47_v6   ;;  %104 = vperm.xlu1 %675, %v46_v7   ;;  %v28_v49 = vld [vmem:[%s921_s0 + $0x40] sm:$0xff]  ;;  %v26_v57 = vld [vmem:[%s921_s0 + $0x30] sm:$0xff]  ;;  %v25_v61 = vld [vmem:[%s921_s0 + $0x28] sm:$0xff] }
   0xb   :  { %v24_v1 = vld [vmem:[%s921_s0 + $0x20] sm:$0xff]  ;;  %v23_v6 = vld [vmem:[%s921_s0 + $0x18] sm:$0xff] }
   0xe   :  { %99 = vperm.xlu0 %674, %v45_v8   ;;  %94 = vperm.xlu1 %675, %v44_v9  }
  0x12   :  { %89 = vperm.xlu0 %674, %v43_v10   ;;  %84 = vperm.xlu1 %675, %v42_v11   ;;  %v22_v10 = vld [vmem:[%s921_s0 + $0x10] sm:$0xff] }
  0x16   :  { %79 = vperm.xlu0 %674, %v41_v12   ;;  %74 = vperm.xlu1 %675, %v40_v13  }
  0x1a   :  { %69 = vperm.xlu0 %674, %v39_v14   ;;  %64 = vperm.xlu1 %675, %v38_v15   ;;  %v21_v14 = vld [vmem:[%s921_s0 + $0x8] sm:$0xff] }
  0x1e   :  { %59 = vperm.xlu0 %674, %v37_v16   ;;  %54 = vperm.xlu1 %675, %v36_v17  }
  0x22   :  { %421 = vperm.xlu0 %674, %v417_v18   ;;  %426 = vperm.xlu1 %675, %v418_v19   ;;  %v20_v18 = vld [vmem:[%s921_s0] sm:$0xff] }
  0x7d   :  { %v130_v22 = vpop.permute.xlu0 %129  ;;  %v120_v27 = vpop.permute.xlu1 %119 }
  0x7e   :  { %v147_v23 = vmul.f32 %v130_v22, %v35_v21  ;;  %v145_v29 = vmul.f32 %v120_v27, %v33_v24  ;;  %v149_v22 = vld [vmem:[%s920_s2 + $0x8] sm:$0xff]  ;;  %v429_v24 = vlaneseq }
  0x80   :  { %600 = vmatprep.subr.msk.mxu0 %vm150_vm0, %v147_v23  ;;  %v295_v26 = vmul.f32 %v147_v23, %v147_v23  ;;  %v293_v33 = vmul.f32 %v145_v29, %v145_v29 }
  0x81   :  { %v125_v28 = vpop.permute.xlu0 %124  ;;  %601 = vmatpush3.xpose.msk.msra.mxu0 %vm150_vm0, %v147_v23  ;;  %v115_v34 = vpop.permute.xlu1 %114  ;;  %v689_v23 = vmov 1.0  }
  0x82   :  { %v146_v30 = vmul.f32 %v125_v28, %v34_v25  ;;  %636 = vmatpush3.xpose.msk.msra.mxu1 %vm150_vm0, %v295_v26  ;;  %v144_v35 = vmul.f32 %v115_v34, %v32_v32  ;;  %v430_v25 = vshrl.u32 %v429_v24, 7 }
  0x83   :  { %637 = vmatprep.subr.mxu1 %v687_v5 }
  0x84   :  { %v294_v31 = vmul.f32 %v146_v30, %v146_v30  ;;  %602 = vmatprep.subr.msk.mxu0 %vm150_vm0, %v146_v30  ;;  %v292_v38 = vmul.f32 %v144_v35, %v144_v35  ;;  %v431_v26 = vsub.s32 0, %v430_v25 }
  0x85   :  { %603 = vmatpush3.xpose.msk.msra.mxu0 %vm150_vm0, %v146_v30  ;;  %v110_v36 = vpop.permute.xlu0 %109  ;;  %v105_v40 = vpop.permute.xlu1 %104 }
  0x86   :  { %638 = vmatpush3.xpose.msk.msra.mxu1 %vm150_vm0, %v294_v31  ;;  %604 = vmatprep.subr.msk.mxu0 %vm150_vm0, %v145_v29  ;;  %v143_v39 = vmul.f32 %v110_v36, %v31_v37  ;;  %v142_v43 = vmul.f32 %v105_v40, %v30_v41 }
  0x87   :  { %639 = vmatprep.subr.mxu1 %v687_v5 }
  0x88   :  { %v291_v42 = vmul.f32 %v143_v39, %v143_v39  ;;  %v290_v46 = vmul.f32 %v142_v43, %v142_v43 }
  0x89   :  { %605 = vmatpush3.xpose.msk.msra.mxu0 %vm150_vm0, %v145_v29  ;;  %v100_v44 = vpop.permute.xlu0 %99  ;;  %v95_v48 = vpop.permute.xlu1 %94 }
  0x8a   :  { %606 = vmatprep.subr.msk.mxu0 %vm150_vm0, %v144_v35  ;;  %640 = vmatpush3.xpose.msk.msra.mxu1 %vm150_vm0, %v293_v33  ;;  %v141_v47 = vmul.f32 %v100_v44, %v29_v45  ;;  %v140_v51 = vmul.f32 %v95_v48, %v28_v49 }
  0x8b   :  { %641 = vmatprep.subr.mxu1 %v687_v5 }
  0x8c   :  { %v289_v50 = vmul.f32 %v141_v47, %v141_v47  ;;  %v288_v54 = vmul.f32 %v140_v51, %v140_v51 }
  0x8d   :  { %607 = vmatpush3.xpose.msk.msra.mxu0 %vm150_vm0, %v144_v35  ;;  %v90_v52 = vpop.permute.xlu0 %89  ;;  %v85_v56 = vpop.permute.xlu1 %84 }
  0x8e   :  { %608 = vmatprep.subr.msk.mxu0 %vm150_vm0, %v143_v39  ;;  %642 = vmatpush3.xpose.msk.msra.mxu1 %vm150_vm0, %v292_v38  ;;  %v139_v55 = vmul.f32 %v90_v52, %v27_v53  ;;  %v138_v59 = vmul.f32 %v85_v56, %v26_v57 }
  0x8f   :  { %643 = vmatprep.subr.mxu1 %v687_v5 }
  0x90   :  { %v287_v58 = vmul.f32 %v139_v55, %v139_v55  ;;  %v286_v62 = vmul.f32 %v138_v59, %v138_v59 }
  0x91   :  { %609 = vmatpush3.xpose.msk.msra.mxu0 %vm150_vm0, %v143_v39  ;;  %v80_v60 = vpop.permute.xlu0 %79  ;;  %v75_v0 = vpop.permute.xlu1 %74 }
  0x92   :  { %610 = vmatprep.subr.msk.mxu0 %vm150_vm0, %v142_v43  ;;  %644 = vmatpush3.xpose.msk.msra.mxu1 %vm150_vm0, %v291_v42  ;;  %v137_v63 = vmul.f32 %v80_v60, %v25_v61  ;;  %v136_v3 = vmul.f32 %v75_v0, %v24_v1 }
  0x93   :  { %645 = vmatprep.subr.mxu1 %v687_v5 }
  0x94   :  { %v285_v2 = vmul.f32 %v137_v63, %v137_v63  ;;  %v284_v7 = vmul.f32 %v136_v3, %v136_v3 }
  0x95   :  { %611 = vmatpush3.xpose.msk.msra.mxu0 %vm150_vm0, %v142_v43  ;;  %v70_v4 = vpop.permute.xlu0 %69  ;;  %v65_v9 = vpop.permute.xlu1 %64 }
  0x96   :  { %612 = vmatprep.subr.msk.mxu0 %vm150_vm0, %v141_v47  ;;  %646 = vmatpush3.xpose.msk.msra.mxu1 %vm150_vm0, %v290_v46  ;;  %v135_v8 = vmul.f32 %v70_v4, %v23_v6  ;;  %v134_v12 = vmul.f32 %v65_v9, %v22_v10 }
  0x97   :  { %647 = vmatprep.subr.mxu1 %v687_v5 }
  0x98   :  { %v283_v11 = vmul.f32 %v135_v8, %v135_v8  ;;  %v282_v15 = vmul.f32 %v134_v12, %v134_v12 }
  0x99   :  { %613 = vmatpush3.xpose.msk.msra.mxu0 %vm150_vm0, %v141_v47  ;;  %v60_v13 = vpop.permute.xlu0 %59  ;;  %v55_v17 = vpop.permute.xlu1 %54  ;;  %v450_v47 = vadd.s32 8, %v430_v25 }
  0x9a   :  { %614 = vmatprep.subr.msk.mxu0 %vm150_vm0, %v140_v51  ;;  %648 = vmatpush3.xpose.msk.msra.mxu1 %vm150_vm0, %v289_v50  ;;  %v133_v16 = vmul.f32 %v60_v13, %v21_v14  ;;  %v132_v20 = vmul.f32 %v55_v17, %v20_v18 }
  0x9b   :  { %649 = vmatprep.subr.mxu1 %v687_v5 }
  0x9c   :  { %v281_v19 = vmul.f32 %v133_v16, %v133_v16  ;;  %v280_v21 = vmul.f32 %v132_v20, %v132_v20 }
  0x9d   :  { %615 = vmatpush3.xpose.msk.msra.mxu0 %vm150_vm0, %v140_v51  ;;  %v422_v28 = vpop.permute.xlu0 %421  ;;  %v427_v31 = vpop.permute.xlu1 %426 }
  0x9e   :  { %616 = vmatprep.subr.msk.mxu0 %vm150_vm0, %v139_v55  ;;  %650 = vmatpush3.xpose.msk.msra.mxu1 %vm150_vm0, %v288_v54 }
  0x9f   :  { %651 = vmatprep.subr.mxu1 %v687_v5 }
  0xa1   :  { %617 = vmatpush3.xpose.msk.msra.mxu0 %vm150_vm0, %v139_v55 }
  0xa2   :  { %618 = vmatprep.subr.msk.mxu0 %vm150_vm0, %v138_v59  ;;  %652 = vmatpush3.xpose.msk.msra.mxu1 %vm150_vm0, %v287_v58 }
  0xa3   :  { %653 = vmatprep.subr.mxu1 %v687_v5 }
  0xa5   :  { %619 = vmatpush3.xpose.msk.msra.mxu0 %vm150_vm0, %v138_v59 }
  0xa6   :  { %620 = vmatprep.subr.msk.mxu0 %vm150_vm0, %v137_v63  ;;  %654 = vmatpush3.xpose.msk.msra.mxu1 %vm150_vm0, %v286_v62 }
  0xa7   :  { %655 = vmatprep.subr.mxu1 %v687_v5 }
  0xa9   :  { %621 = vmatpush3.xpose.msk.msra.mxu0 %vm150_vm0, %v137_v63 }
  0xaa   :  { %622 = vmatprep.subr.msk.mxu0 %vm150_vm0, %v136_v3  ;;  %656 = vmatpush3.xpose.msk.msra.mxu1 %vm150_vm0, %v285_v2 }
  0xab   :  { %657 = vmatprep.subr.mxu1 %v687_v5 }
  0xad   :  { %623 = vmatpush3.xpose.msk.msra.mxu0 %vm150_vm0, %v136_v3 }
  0xae   :  { %624 = vmatprep.subr.msk.mxu0 %vm150_vm0, %v135_v8  ;;  %658 = vmatpush3.xpose.msk.msra.mxu1 %vm150_vm0, %v284_v7 }
  0xaf   :  { %659 = vmatprep.subr.mxu1 %v687_v5 }
  0xb1   :  { %625 = vmatpush3.xpose.msk.msra.mxu0 %vm150_vm0, %v135_v8 }
  0xb2   :  { %626 = vmatprep.subr.msk.mxu0 %vm150_vm0, %v134_v12  ;;  %660 = vmatpush3.xpose.msk.msra.mxu1 %vm150_vm0, %v283_v11 }
  0xb3   :  { %661 = vmatprep.subr.mxu1 %v687_v5 }
  0xb5   :  { %627 = vmatpush3.xpose.msk.msra.mxu0 %vm150_vm0, %v134_v12 }
  0xb6   :  { %628 = vmatprep.subr.msk.mxu0 %vm150_vm0, %v133_v16  ;;  %662 = vmatpush3.xpose.msk.msra.mxu1 %vm150_vm0, %v282_v15 }
  0xb7   :  { %663 = vmatprep.subr.mxu1 %v687_v5 }
  0xb9   :  { %629 = vmatpush3.xpose.msk.msra.mxu0 %vm150_vm0, %v133_v16  ;;  %v500_v16 = vand.u32 127, %v429_v24 }
  0xba   :  { %630 = vmatprep.subr.msk.mxu0 %vm150_vm0, %v132_v20  ;;  %664 = vmatpush3.xpose.msk.msra.mxu1 %vm150_vm0, %v281_v19 }
  0xbb   :  { %665 = vmatprep.subr.mxu1 %v687_v5  ;;  %vm504_vm12 = vcmp.lt.s32.totalorder %v500_v16, 16 }
  0xbd   :  { %631 = vmatpush3.xpose.msk.msra.mxu0 %vm150_vm0, %v132_v20 }
  0xbe   :  { %666 = vmatpush3.xpose.msk.msra.mxu1 %vm150_vm0, %v280_v21 }
  0xc0   :  { %633 = vmatmul.mubr.msk.f32.vlgmr.msra.gmra.mxu0 %vm150_vm0, %v149_v22 }
  0xc1   :  { %668 = vmatmul.mubr.msk.f32.vlgmr.msra.gmra.mxu1 %vm150_vm0, %v689_v23 }
 0x180   :  { %v634_v27 = vpop.f32.mrf.mxu0 }
 0x181   :  { %v413_v5 = vpop.f32.mrf.mxu1  ;;  %v436_v34 = vmul.f32 2.0, %v634_v27 }
 0x182   :  { %v432_v29 = vrot.slane %v413_v5, %v431_v26  ;;  %v271_v30 = vpop.f32.mrf.mxu0 }
 0x183   :  { %v435_v32 = vmul.f32 2.0, %v271_v30  ;;  %v669_v33 = vpop.f32.mrf.mxu1 }
 0x184   :  { %v433_v35 = vadd.f32 %v432_v29, %v422_v28  ;;  %v434_v36 = vadd.f32 %v432_v29, %v427_v31 }
 0x186   :  { %v438_v37 = vsub.f32 %v434_v36, %v436_v34  ;;  %v437_v38 = vsub.f32 %v433_v35, %v435_v32 }
 0x188   :  { %v440_v39 = vmax.f32 %v438_v37, 0.0  ;;  %v439_v40 = vmax.f32 %v437_v38, 0.0 }
 0x18a   :  { %676 = vrsqrt.f32 %v440_v39  ;;  %v441_v41 = vmin.f32 %v439_v40, %v440_v39  ;;  %vm469_vm2 = vcmp.eq.f32.partialorder %v439_v40, inf  ;;  %vm476_vm5 = vcmp.eq.f32.partialorder %v440_v39, inf }
 0x18b   :  { %678 = vrsqrt.f32 %v439_v40  ;;  %v479_v55 = vand.u32 2147483648, %v440_v39  ;;  %v472_v56 = vand.u32 2147483648, %v439_v40  ;;  %vm478_vm7 = vcmp.eq.f32.partialorder %v440_v39, 0.0 }
 0x18c   :  { %v442_v42 = vrot.slane %v441_v41, 4  ;;  %vm471_vm8 = vcmp.eq.f32.partialorder %v439_v40, 0.0 }
 0x18e   :  { %v443_v43 = vmin.f32 %v441_v41, %v442_v42 }
 0x190   :  { %v444_v44 = vrot.slane %v443_v43, 2 }
 0x192   :  { %v445_v45 = vmin.f32 %v443_v43, %v444_v44 }
 0x194   :  { %v446_v46 = vrot.slane %v445_v45, 1 }
 0x196   :  { %v447_v48 = vmin.f32 %v445_v45, %v446_v46 }
 0x197   :  { %v677_v49 = vpop.eup %676 }
 0x198   :  { %v679_v50 = vpop.eup %678  ;;  %vm451_vm3 = vcmp.le.f32.partialorder %v439_v40, %v447_v48  ;;  %vm452_vm4 = vcmp.le.f32.partialorder %v440_v39, %v447_v48  ;;  %v475_v51 = vmul.f32 %v677_v49, %v440_v39 }
 0x199   :  { %v453_v52 = vsel %vm451_vm3, %v430_v25, 16  ;;  %v454_v53 = vsel %vm452_vm4, %v450_v47, 16  ;;  %v468_v54 = vmul.f32 %v679_v50, %v439_v40 }
 0x19a   :  { %vm455_vm6 = vcmp.lt.s32.totalorder %v453_v52, %v454_v53  ;;  %v477_v57 = vsel %vm476_vm5, %v440_v39, %v475_v51 }
 0x19b   :  { %v456_v58 = vsel %vm455_vm6, %v453_v52, %v454_v53  ;;  %v470_v59 = vsel %vm469_vm2, %v439_v40, %v468_v54  ;;  %v480_v60 = vsel %vm478_vm7, %v479_v55, %v477_v57 }
 0x19c   :  { %v457_v61 = vrot.slane %v456_v58, 4  ;;  %v473_v62 = vsel %vm471_vm8, %v472_v56, %v470_v59  ;;  %v482_v63 = vadd.f32 1.0, %v480_v60 }
 0x19d   :  { %v481_v0 = vadd.f32 1.0, %v473_v62 }
 0x19e   :  { %vm458_vm9 = vcmp.lt.s32.totalorder %v456_v58, %v457_v61  ;;  %680 = vrcp.f32 %v482_v63 }
 0x19f   :  { %v459_v1 = vsel %vm458_vm9, %v456_v58, %v457_v61  ;;  %682 = vrcp.f32 %v481_v0 }
 0x1a0   :  { %v460_v2 = vrot.slane %v459_v1, 2 }
 0x1a2   :  { %vm461_vm10 = vcmp.lt.s32.totalorder %v459_v1, %v460_v2 }
 0x1a3   :  { %v462_v3 = vsel %vm461_vm10, %v459_v1, %v460_v2 }
 0x1a4   :  { %v463_v4 = vrot.slane %v462_v3, 1 }
 0x1a6   :  { %vm464_vm11 = vcmp.lt.s32.totalorder %v462_v3, %v463_v4 }
 0x1a7   :  { %v465_v6 = vsel %vm464_vm11, %v462_v3, %v463_v4 }
 0x1a8   :  { %466 = vst [vmem:[%s922_s5] sm:$0x1] %v465_v6 }
 0x1ab   :  { %v681_v7 = vpop.eup %680 }
 0x1ac   :  { %v683_v8 = vpop.eup %682 }
 0x1ad   :  { %v487_v9 = vadd.f32 %v683_v8, %v681_v7 }
 0x1af   :  { %v488_v10 = vrot.slane %v487_v9, 4 }
 0x1b1   :  { %v489_v11 = vadd.f32 %v488_v10, %v487_v9 }
 0x1b3   :  { %v490_v12 = vrot.slane %v489_v11, 2 }
 0x1b5   :  { %v491_v13 = vadd.f32 %v490_v12, %v489_v11 }
 0x1b7   :  { %v492_v14 = vrot.slane %v491_v13, 1 }
 0x1b9   :  { %v493_v15 = vadd.f32 %v492_v14, %v491_v13 }
 0x1bb   :  { %684 = vrcp.f32 %v493_v15 }
 0x1c8   :  { %v685_v17 = vpop.eup %684 }
 0x1c9   :  { %v496_v18 = vmul.f32 %v685_v17, %v681_v7  ;;  %v495_v19 = vmul.f32 %v685_v17, %v683_v8 }
 0x1cb   :  { %v506_v20 = vmul.f32 %v496_v18, %v496_v18  ;;  %498 = vst [vmem:[%s923_s4 + $0x8] sm:$0xff] %v496_v18  ;;  %v505_v21 = vmul.f32 %v495_v19, %v495_v19  ;;  %497 = vst [vmem:[%s923_s4] sm:$0xff] %v495_v19 }
 0x1cd   :  { %v510_v22 = vsel %vm504_vm12, %v506_v20, 0.0  ;;  %v509_v23 = vsel %vm504_vm12, %v505_v21, 0.0 }
 0x1ce   :  { %513 = vadd.xlane.f32.xlu1 %v510_v22  ;;  %511 = vadd.xlane.f32.xlu0 %v509_v23 }
 0x257   :  { %v514_v24 = vpop.xlane.xlu1 %513  ;;  %v512_v25 = vpop.xlane.xlu0 %511 }
 0x258   :  { %517 = vst.msk [vmem:[%s924_s6 + $0x8] sm:$0xff] %vm515_vm13, %v514_v24  ;;  %516 = vst.msk [vmem:[%s924_s6] sm:$0xff] %vm515_vm13, %v512_v25 }

</bundles_post_ra>
